<compile_context>
chip_gen: v6e
topology: v6e:2x2x1
jax: 0.10.0
libtpu: 0.0.40
codegen_flags: <defaults>
</compile_context>

<pallas_src>
import functools

import jax
import jax.numpy as jnp
from jax.experimental import pallas as pl
from jax.experimental.pallas import tpu as pltpu


_LANE = 128


@functools.lru_cache(maxsize=None)
def _tpu_budgets():
    """Per-generation budgets derived from physical VMEM.

    Returns (vmem_limit_bytes, fused_slab_limit_bytes, hw_tile_budget_bytes,
    num_tensorcores).  Falls back to v7x-safe values (64 MiB VMEM, 1 core) if
    the hardware query is unavailable, which is safe on every generation.
    """
    vmem_phys = 64 * 1024 * 1024
    num_cores = 1
    try:
        info = pltpu.get_tpu_info()
        v = int(getattr(info, "vmem_capacity_bytes", 0) or 0)
        if v:
            vmem_phys = max(32 * 1024 * 1024, min(v, 256 * 1024 * 1024))
        for name in ("num_cores", "num_tensorcores", "tensorcores_per_chip",
                     "cores_per_chip", "tensor_core_count"):
            c = getattr(info, name, None)
            if c:
                num_cores = int(c)
                break
    except Exception:
        pass
    # Leave 1/4 of physical VMEM as compiler headroom.
    vmem_limit = (vmem_phys * 3) // 4            # 96 MiB on v5e/v6e, 48 MiB on v7x
    # Fused path: Pallas double-buffers input and output -> ~4x slab + scratch.
    fused_slab_limit = max(2 * 1024 * 1024, (vmem_limit - 2 * 1024 * 1024) // 4)
    # Streaming path: 2x in-block + 2x out-block + tiny gate must fit.
    hw_tile_budget = max(2 * 1024 * 1024,
                         min(8 * 1024 * 1024, (vmem_limit - 1024 * 1024) // 5))
    return vmem_limit, fused_slab_limit, hw_tile_budget, num_cores


def _gate_from_padded_mean(padded_mean, taps_ref, n_ch, k_size):
    """padded_mean: (n_ch + 2*pad, 1) f32 with zeros outside [pad, pad+n_ch).
    Conv1d cross-correlation (zero padding) as k shifted adds + sigmoid."""
    logits = jnp.zeros((n_ch, 1), jnp.float32)
    for j in range(k_size):
        logits = logits + taps_ref[j] * padded_mean[j:j + n_ch, :]
    return jax.nn.sigmoid(logits)


def _eca_fused_kernel(taps_ref, x_ref, o_ref, pad_scr, *, n_ch, k_size, pad, inv_hw):
    # x_ref / o_ref: (C, HW) one batch element (full-extent block, no padding);
    # taps_ref: (k,) f32 in SMEM.
    pad_scr[...] = jnp.zeros_like(pad_scr)
    pad_scr[pl.ds(pad, n_ch), :] = (
        jnp.sum(x_ref[...], axis=-1, keepdims=True, dtype=jnp.float32)
        * jnp.float32(inv_hw))
    gate = _gate_from_padded_mean(pad_scr[...], taps_ref, n_ch, k_size)
    o_ref[...] = x_ref[...] * gate.astype(o_ref.dtype)


def _eca_pool_gate_kernel(taps_ref, x_ref, gate_ref, acc_scr,
                          *, n_ch, k_size, pad, hw_total, hw_tile, inv_hw):
    # Grid: (B, num_hw_tiles); hw axis is the reduction ("arbitrary") axis.
    h = pl.program_id(1)

    @pl.when(h == 0)
    def _init():
        acc_scr[...] = jnp.zeros_like(acc_scr)

    x = x_ref[...]
    if hw_total % hw_tile != 0:
        # Ragged tail: out-of-bounds lanes of the partial last block contain
        # garbage; mask them so the pooled sum stays exact.
        lane = jax.lax.broadcasted_iota(jnp.int32, x.shape, 1)
        valid = (h * hw_tile + lane) < hw_total
        x = jnp.where(valid, x, jnp.zeros_like(x))

    # Accumulate per-channel sums in f32 into the padded scratch (edges stay 0).
    acc_scr[pl.ds(pad, n_ch), :] += jnp.sum(
        x, axis=-1, keepdims=True, dtype=jnp.float32)

    @pl.when(h == pl.num_programs(1) - 1)
    def _finalize():
        padded_mean = acc_scr[...] * jnp.float32(inv_hw)
        # Gate is emitted already in x.dtype (single cast here).
        gate_ref[...] = _gate_from_padded_mean(
            padded_mean, taps_ref, n_ch, k_size).astype(gate_ref.dtype)


def _eca_scale_kernel(gate_ref, x_ref, o_ref):
    # Native-dtype streaming multiply: (C, THW) * (C, 1) gate.  Partial last
    # blocks are fine: OOB output lanes are dropped on write by Pallas.
    o_ref[...] = x_ref[...] * gate_ref[...]


def _choose_hw_tile(hw, n_ch, itemsize, budget_bytes):
    """Largest multiple-of-128 lane tile whose (C, tile) block fits the budget,
    capped at HW rounded up to 128 (the grid uses cdiv + in-kernel masking, so
    the tile does NOT have to divide HW)."""
    hw_ceil = -(-hw // _LANE) * _LANE
    max_lanes = (budget_bytes // max(1, n_ch * itemsize)) // _LANE * _LANE
    return int(max(_LANE, min(hw_ceil, max_lanes)))


@functools.partial(jax.jit, static_argnames=("force_two_pass", "hw_tile"))
def eca_forward(x_nchw, conv_weight, *, force_two_pass=False, hw_tile=None):
    """x_nchw: (B, C, H, W); conv_weight: Conv1d weight reshapable to (k,)."""
    B, C, H, W = x_nchw.shape
    taps = conv_weight.reshape(-1).astype(jnp.float32)
    k_size = int(taps.shape[0])
    assert k_size % 2 == 1, "ECA uses an odd Conv1d kernel size"
    pad = (k_size - 1) // 2

    HW = H * W
    itemsize = jnp.dtype(x_nchw.dtype).itemsize
    x_flat = x_nchw.reshape(B, C, HW)          # view; no HBM padding round-trip

    vmem_limit, fused_slab_limit, hw_tile_budget, num_cores = _tpu_budgets()

    slab_bytes = C * HW * itemsize
    use_fused = (not force_two_pass) and slab_bytes <= fused_slab_limit
    # Multi-TensorCore chips (v7x): with B==1 the fused (B,) grid runs on a
    # single core; the streaming scale pass's ("parallel","parallel") grid
    # shards HW across cores, so prefer it when there is enough work to split.
    if use_fused and num_cores > 1 and B < num_cores and slab_bytes > 2 * hw_tile_budget:
        use_fused = False

    if use_fused:
        out_flat = pl.pallas_call(
            functools.partial(_eca_fused_kernel, n_ch=C, k_size=k_size,
                              pad=pad, inv_hw=1.0 / HW),
            out_shape=jax.ShapeDtypeStruct((B, C, HW), x_flat.dtype),
            grid_spec=pltpu.PrefetchScalarGridSpec(
                num_scalar_prefetch=0,
                grid=(B,),
                in_specs=[
                    pl.BlockSpec(memory_space=pltpu.MemorySpace.SMEM),   # conv taps
                    pl.BlockSpec((pl.Squeezed(), C, HW), lambda b: (b, 0, 0)),
                ],
                out_specs=pl.BlockSpec((pl.Squeezed(), C, HW), lambda b: (b, 0, 0)),
                scratch_shapes=[pltpu.VMEM((C + 2 * pad, 1), jnp.float32)],
            ),
            compiler_params=pltpu.CompilerParams(
                dimension_semantics=("parallel",),
                vmem_limit_bytes=vmem_limit),
        )(taps, x_flat)
    else:
        if hw_tile is None:
            hw_tile = _choose_hw_tile(HW, C, itemsize, hw_tile_budget)
        assert hw_tile % _LANE == 0
        nhw = -(-HW // hw_tile)    # cdiv grid; ragged last tile masked in-kernel

        # Pass 1: per-channel pooling (+ conv taps + sigmoid at the last tile).
        gate = pl.pallas_call(
            functools.partial(_eca_pool_gate_kernel, n_ch=C, k_size=k_size,
                              pad=pad, hw_total=HW, hw_tile=hw_tile,
                              inv_hw=1.0 / HW),
            out_shape=jax.ShapeDtypeStruct((B, C, 1), x_flat.dtype),
            grid_spec=pltpu.PrefetchScalarGridSpec(
                num_scalar_prefetch=0,
                grid=(B, nhw),
                in_specs=[
                    pl.BlockSpec(memory_space=pltpu.MemorySpace.SMEM),
                    pl.BlockSpec((pl.Squeezed(), C, hw_tile), lambda b, h: (b, 0, h)),
                ],
                out_specs=pl.BlockSpec((pl.Squeezed(), C, 1), lambda b, h: (b, 0, 0)),
                scratch_shapes=[pltpu.VMEM((C + 2 * pad, 1), jnp.float32)],
            ),
            compiler_params=pltpu.CompilerParams(
                dimension_semantics=("parallel", "arbitrary"),
                vmem_limit_bytes=vmem_limit),
        )(taps, x_flat)

        # Pass 2: stream x and scale by the per-channel gate.
        # (input_output_aliases is deliberately not used: inside jit the caller's
        #  x is not donated, so aliasing would force XLA to insert an x-sized copy.)
        out_flat = pl.pallas_call(
            _eca_scale_kernel,
            out_shape=jax.ShapeDtypeStruct((B, C, HW), x_flat.dtype),
            grid_spec=pltpu.PrefetchScalarGridSpec(
                num_scalar_prefetch=0,
                grid=(B, nhw),
                in_specs=[
                    pl.BlockSpec((pl.Squeezed(), C, 1), lambda b, h: (b, 0, 0)),
                    pl.BlockSpec((pl.Squeezed(), C, hw_tile), lambda b, h: (b, 0, h)),
                ],
                out_specs=pl.BlockSpec((pl.Squeezed(), C, hw_tile), lambda b, h: (b, 0, h)),
            ),
            compiler_params=pltpu.CompilerParams(
                dimension_semantics=("parallel", "parallel"),
                vmem_limit_bytes=vmem_limit),
        )(gate, x_flat)

    return out_flat.reshape(B, C, H, W)


def _eca_reference(x_nchw, conv_weight):
    """Pure-JAX reference mirroring the PyTorch forward."""
    w = conv_weight.reshape(-1).astype(jnp.float32)
    B, C, H, W = x_nchw.shape
    k = w.shape[0]
    pad = (k - 1) // 2
    pooled = jnp.mean(x_nchw.astype(jnp.float32), axis=(2, 3))        # (B, C)
    padded = jnp.pad(pooled, ((0, 0), (pad, pad)))
    logits = jnp.zeros((B, C), jnp.float32)
    for j in range(k):
        logits = logits + w[j] * padded[:, j:j + C]
    gate = jax.nn.sigmoid(logits)[:, :, None, None]                   # (B,C,1,1)
    return (x_nchw.astype(jnp.float32) * gate).astype(x_nchw.dtype)


if __name__ == "__main__":
    key = jax.random.PRNGKey(0)
    kx, kw, kx2, kx3 = jax.random.split(key, 4)

    k_size = 3
    conv_w = jax.random.normal(kw, (1, 1, k_size), dtype=jnp.float32) * 0.5

    # Small, sublane/lane-friendly case: exercises the fused single-pass path.
    B, C, H, W = 2, 16, 16, 16
    x = jax.random.normal(kx, (B, C, H, W), dtype=jnp.float32)
    ref = _eca_reference(x, conv_w)
    out_fused = jax.block_until_ready(eca_forward(x, conv_w))
    assert out_fused.shape == ref.shape
    assert jnp.allclose(out_fused, ref, atol=1e-5, rtol=1e-5), "fused path mismatch"

    # Two-pass streaming path with multiple HW tiles (exercises accumulation).
    out_2p = jax.block_until_ready(
        eca_forward(x, conv_w, force_two_pass=True, hw_tile=128))
    assert jnp.allclose(out_2p, ref, atol=1e-5, rtol=1e-5), "two-pass mismatch"

    # Spatial size not a multiple of 128: fused full-extent block, no padding.
    x2 = jax.random.normal(kx2, (1, 8, 10, 10), dtype=jnp.float32)
    ref2 = _eca_reference(x2, conv_w)
    out2 = jax.block_until_ready(eca_forward(x2, conv_w))
    assert jnp.allclose(out2, ref2, atol=1e-5, rtol=1e-5), "ragged fused mismatch"

    # Ragged HW with a partial last streaming tile (exercises the in-kernel
    # tail mask: HW = 900 = 3*256 + 132) and the dropped OOB output writes.
    x3 = jax.random.normal(kx3, (1, 8, 30, 30), dtype=jnp.float32)
    ref3 = _eca_reference(x3, conv_w)
    out3 = jax.block_until_ready(
        eca_forward(x3, conv_w, force_two_pass=True, hw_tile=256))
    assert jnp.allclose(out3, ref3, atol=1e-5, rtol=1e-5), "ragged two-pass mismatch"

    print("KERNEL_OK")
</pallas_src>

<mosaic_0001>
module attributes {stable_mosaic.version = 11 : i64} {
  func.func @_eca_fused_kernel(%arg0: i32, %arg1: memref<3xf32, #tpu.memory_space<smem>>, %arg2: memref<1x16x256xf32, #tpu.memory_space<vmem>>, %arg3: memref<1x16x256xf32, #tpu.memory_space<vmem>>, %arg4: memref<18x1xf32, #tpu.memory_space<vmem>>) attributes {dimension_semantics = [#tpu.dimension_semantics<parallel>], iteration_bounds = array<i64: 2>, scalar_prefetch = 0 : i64, scratch_operands = 1 : i64, tpu.core_type = #tpu.core_type<tc>, window_params = [{transform_indices = @transform_0, window_bounds = array<i64: 3>}, {transform_indices = @transform_1, window_bounds = array<i64: 1, 16, 256>}, {transform_indices = @transform_2, window_bounds = array<i64: 1, 16, 256>}]} {
    %cst = arith.constant 0.000000e+00 : f32
    %0 = vector.broadcast %cst : f32 to vector<18x1xf32>
    %c0 = arith.constant 0 : index
    %c0_0 = arith.constant 0 : index
    %1 = vector.load %arg4[%c0, %c0_0] : memref<18x1xf32, #tpu.memory_space<vmem>>, vector<18x1xf32>
    tpu.vector_store %arg4[%c0, %c0_0], %0 {strides = array<i32>} : memref<18x1xf32, #tpu.memory_space<vmem>>, vector<18x1xf32>,
    %c0_1 = arith.constant 0 : index
    %c0_2 = arith.constant 0 : index
    %c0_3 = arith.constant 0 : index
    %2 = vector.load %arg2[%c0_1, %c0_2, %c0_3] : memref<1x16x256xf32, #tpu.memory_space<vmem>>, vector<1x16x256xf32>
    %3 = vector.shape_cast %2 : vector<1x16x256xf32> to vector<16x256xf32>
    %cst_4 = arith.constant dense<0.000000e+00> : vector<16xf32>
    %4 = vector.multi_reduction <add>, %3, %cst_4 [1] : vector<16x256xf32> to vector<16xf32>
    %5 = vector.shape_cast %4 : vector<16xf32> to vector<16x1xf32>
    %cst_5 = arith.constant 3.906250e-03 : f32
    %6 = vector.broadcast %cst_5 : f32 to vector<16x1xf32>
    %7 = arith.mulf %5, %6 : vector<16x1xf32>
    %c1 = arith.constant 1 : index
    %c0_6 = arith.constant 0 : index
    %8 = vector.load %arg4[%c1, %c0_6] : memref<18x1xf32, #tpu.memory_space<vmem>>, vector<16x1xf32>
    tpu.vector_store %arg4[%c1, %c0_6], %7 {strides = array<i32>} : memref<18x1xf32, #tpu.memory_space<vmem>>, vector<16x1xf32>,
    %c0_7 = arith.constant 0 : index
    %c0_8 = arith.constant 0 : index
    %9 = vector.load %arg4[%c0_7, %c0_8] : memref<18x1xf32, #tpu.memory_space<vmem>>, vector<18x1xf32>
    %cst_9 = arith.constant 0.000000e+00 : f32
    %10 = vector.broadcast %cst_9 : f32 to vector<16x1xf32>
    %c0_10 = arith.constant 0 : index
    %11 = memref.load %arg1[%c0_10] : memref<3xf32, #tpu.memory_space<smem>>
    %12 = vector.extract_strided_slice %9 {offsets = [0, 0], sizes = [16, 1], strides = [1, 1]} : vector<18x1xf32> to vector<16x1xf32>
    %13 = vector.broadcast %11 : f32 to vector<16x1xf32>
    %14 = arith.mulf %13, %12 : vector<16x1xf32>
    %15 = arith.addf %10, %14 : vector<16x1xf32>
    %c1_11 = arith.constant 1 : index
    %16 = memref.load %arg1[%c1_11] : memref<3xf32, #tpu.memory_space<smem>>
    %17 = vector.extract_strided_slice %9 {offsets = [1, 0], sizes = [16, 1], strides = [1, 1]} : vector<18x1xf32> to vector<16x1xf32>
    %18 = vector.broadcast %16 : f32 to vector<16x1xf32>
    %19 = arith.mulf %18, %17 : vector<16x1xf32>
    %20 = arith.addf %15, %19 : vector<16x1xf32>
    %c2 = arith.constant 2 : index
    %21 = memref.load %arg1[%c2] : memref<3xf32, #tpu.memory_space<smem>>
    %22 = vector.extract_strided_slice %9 {offsets = [2, 0], sizes = [16, 1], strides = [1, 1]} : vector<18x1xf32> to vector<16x1xf32>
    %23 = vector.broadcast %21 : f32 to vector<16x1xf32>
    %24 = arith.mulf %23, %22 : vector<16x1xf32>
    %25 = arith.addf %20, %24 : vector<16x1xf32>
    %26 = arith.negf %25 : vector<16x1xf32>
    %27 = math.exp %26 : vector<16x1xf32>
    %cst_12 = arith.constant 1.000000e+00 : f32
    %28 = vector.broadcast %cst_12 : f32 to vector<16x1xf32>
    %29 = arith.addf %28, %27 : vector<16x1xf32>
    %30 = arith.divf %28, %29 : vector<16x1xf32>
    %c0_13 = arith.constant 0 : index
    %c0_14 = arith.constant 0 : index
    %c0_15 = arith.constant 0 : index
    %31 = vector.load %arg2[%c0_13, %c0_14, %c0_15] : memref<1x16x256xf32, #tpu.memory_space<vmem>>, vector<1x16x256xf32>
    %32 = vector.shape_cast %31 : vector<1x16x256xf32> to vector<16x256xf32>
    %33 = vector.broadcast %30 : vector<16x1xf32> to vector<16x256xf32>
    %34 = arith.mulf %32, %33 : vector<16x256xf32>
    %c0_16 = arith.constant 0 : index
    %c0_17 = arith.constant 0 : index
    %c0_18 = arith.constant 0 : index
    %35 = vector.load %arg3[%c0_16, %c0_17, %c0_18] : memref<1x16x256xf32, #tpu.memory_space<vmem>>, vector<1x16x256xf32>
    %36 = vector.shape_cast %35 : vector<1x16x256xf32> to vector<16x256xf32>
    %37 = vector.shape_cast %34 : vector<16x256xf32> to vector<1x16x256xf32>
    tpu.vector_store %arg3[%c0_16, %c0_17, %c0_18], %37 {strides = array<i32>} : memref<1x16x256xf32, #tpu.memory_space<vmem>>, vector<1x16x256xf32>,
    return
  }
  func.func @transform_0(%arg0: i32) -> i32 {
    %c0_i32 = arith.constant 0 : i32
    %c0_i32_0 = arith.constant 0 : i32
    return %c0_i32 : i32
  }
  func.func @transform_1(%arg0: i32) -> (i32, i32, i32) {
    %c0_i32 = arith.constant 0 : i32
    %c0_i32_0 = arith.constant 0 : i32
    %c0_i32_1 = arith.constant 0 : i32
    return %arg0, %c0_i32, %c0_i32_0 : i32, i32, i32
  }
  func.func @transform_2(%arg0: i32) -> (i32, i32, i32) {
    %c0_i32 = arith.constant 0 : i32
    %c0_i32_0 = arith.constant 0 : i32
    %c0_i32_1 = arith.constant 0 : i32
    return %arg0, %c0_i32, %c0_i32_0 : i32, i32, i32
  }
}

</mosaic_0001>

<bundles_post_ra>
// kernel: eca_forward.1
= control target key start
LH: loop header
LB: loop body
LE: loop exit
PB: predicated region body
PF: predicated region fallthrough
CT: control target
= control target key end

     0   :  { %7 = vsyncpa [#allocation4], 0  ;;  %s418_s9 = smov 0   ;;  %s484_s0 = inlined_call_operand.vmem [shape: f32[3], index: 0, kind: input, shape index: {}]   ;;  %s485_s1 = inlined_call_operand.vmem [shape: f32[2,16,256], index: 1, kind: input, shape index: {}]   ;;  %s486_s2 = inlined_call_operand.vmem [shape: f32[2,16,256], index: 2, kind: output, shape index: {}]  }
   0x1 LB: > { %s424_s10 = sadd.s32 4294967295, %s398_s9   ;;  %p325_p0 = scmp.ge.s32.totalorder %s398_s9, 1  ;;  %s398_s9 = sphi %s418_s9, %s13_s9  }
   0x2   : > { %p91_p1 = scmp.lt.s32.totalorder %s398_s9, 3  ;;  %s104_s13 = sshll.u32 %s484_s0, 4  ;;  %s105_s13 = int_to_ptr.vmem [resolvable:$true] %s104_s13 }
   0x3   : > { %p350_p3 = scmp.eq.s32.totalorder %s424_s10, 0  ;;  %s373_s15 = scalar_lea.vmem %s105_s13, 16 }
   0x4   : > { %p431_p2 = pnand %p325_p0, %p91_p1  ;;  %p374_p6 = scmp.ne.s32.totalorder %s105_s13, %s373_s15 }
   0x5   : > { %p381_p10 = scmp.lt.s32.totalorder %s105_s13, %s105_s13  ;;  %p382_p11 = scmp.lt.s32.totalorder %s373_s15, %s373_s15 }
   0x6   : > { %p346_p4 = pneg %p431_p2 }
   0x7   : > { %p383_p12 = por %p382_p11, %p381_p10 }
   0x8   : > { %p347_p5 = pnand %p350_p3, %p346_p4 }
   0xa   : > { %p375_p7 = pneg %p347_p5 }
   0xc   : > { %p376_p8 = pnand %p375_p7, %p374_p6 }
   0xe   : > { %p377_p9 = pneg %p376_p8 }
  0x10   : > { %p384_p13 = pnand %p383_p12, %p377_p9 }
  0x12   : > { %387 = shalt.err (!%p384_p13)
}
  0x13   : > { %s400_s16 = smov [#allocation3]   ;;  %125 = sbr.rel (%p431_p2) target bundleno = 359 (0x167), region = 28 }
  0x14   : > { %349 = dma.vmem_to_smem (!%p347_p5), %s105_s13, 16, %s400_s16, [#allocation4]  }
  0x18   : > { %393 = dma.done.wait (%p350_p3), [#allocation4], 16  }
  0x19   : > { %395 = vsyncadd (%p350_p3), [#allocation4], 4294967280 }
  0x1a   : > { %131 = sfence }
  0x1b   : > { %p148_p0 = scmp.lt.s32.totalorder %s424_s10, 1  ;;  %vm158_vm0 = vcmask 7168   ;;  %v401_v0 = vmov 0.0   ;;  %vm161_vm1 = vcmask 1024   ;;  %v402_v7 = vmov 0   ;;  %s334_s21 = sld [smem:[#allocation3 + $0x1]] }
  0x1c   : > { %159 = vst.msk [vmem:[#allocation2] sm:$0xff] %vm158_vm0, %v401_v0  ;;  %160 = vst.msk [vmem:[#allocation2 + $0x8] sm:$0xff] %vm158_vm0, %v401_v0  ;;  %363 = vset.pattern.permute.xlu1 %v402_v7  ;;  %364 = vset.pattern.permute.xlu0 %v402_v7  ;;  %s335_s22 = sld [smem:[#allocation3 + $0x2]]  ;;  %vm194_vm2 = vcmask 1046528   ;;  %vm212_vm3 = vcmask 1045504  }
  0x1d   : > { %s489_s10 = smov (!%p148_p0, %s424_s10), 1  ;;  %162 = vst.msk [vmem:[#allocation2 + $0x10] sm:$0x3] %vm161_vm1, %v401_v0  ;;  %s180_s23 = sld [smem:[#allocation3]] }
  0x1e   : > { %s340_s17 = sshll.u32 %s489_s10, 5 }
  0x1f   : > { %s152_s20 = scalar_lea.vmem %s485_s1, %s340_s17  ;;  %s157_s26 = scalar_lea.vmem %s486_s2, %s340_s17 }
  0x20   : > { %v458_v1 = vld [vmem:[%s152_s20] sm:$0xff]  ;;  %v460_v2 = vld [vmem:[%s152_s20 + $0x8] sm:$0xff]  ;;  %v462_v3 = vld [vmem:[%s152_s20 + $0x10] sm:$0xff] }
  0x21   : > { %v167_v4 = vadd.f32 %v460_v2, %v458_v1  ;;  %v466_v5 = vld [vmem:[%s152_s20 + $0x18] sm:$0xff]  ;;  %v187_v12 = vstv %s334_s21 }
  0x22   : > { %v170_v6 = vadd.f32 %v466_v5, %v462_v3  ;;  %v205_v14 = vstv %s335_s22 }
  0x23   : > { %168 = vadd.xlane.f32.xlu0 %v167_v4  ;;  %v181_v18 = vstv %s180_s23 }
  0x27   : > { %171 = vadd.xlane.f32.xlu0 %v170_v6 }
  0xac   : > { %v169_v8 = vpop.xlane.xlu0 %168 }
  0xad   : > { %v173_v9 = vmul.f32 0.00390625, %v169_v8 }
  0xaf   : > { %175 = vst.msk [vmem:[#allocation2 + $0x1] sm:$0xff] %vm158_vm0, %v173_v9 }
  0xb0   : > { %v172_v10 = vpop.xlane.xlu0 %171 }
  0xb1   : > { %v174_v11 = vmul.f32 0.00390625, %v172_v10 }
  0xb3   : > { %176 = vst.msk [vmem:[#allocation2 + $0x9] sm:$0xff] %vm158_vm0, %v174_v11 }
  0xb6   : > { %v177_v13 = vld [vmem:[#allocation2] sm:$0xff] }
  0xb7   : > { %v188_v15 = vmul.f32 %v187_v12, %v177_v13  ;;  %v206_v19 = vmul.f32 %v205_v14, %v177_v13  ;;  %v182_v29 = vmul.f32 %v181_v18, %v177_v13 }
  0xb9   : > { %v195_v24 = vrot.slane %v188_v15, 1  ;;  %v213_v33 = vrot.slane %v206_v19, 2 }
  0xba   : > { %v178_v16 = vld [vmem:[#allocation2 + $0x8] sm:$0xff]  ;;  %v179_v17 = vld [vmem:[#allocation2 + $0x10] sm:$0x3] }
  0xbb   : > { %v189_v20 = vmul.f32 %v187_v12, %v178_v16  ;;  %v190_v21 = vmul.f32 %v187_v12, %v179_v17  ;;  %v207_v22 = vmul.f32 %v205_v14, %v178_v16  ;;  %v208_v23 = vmul.f32 %v205_v14, %v179_v17 }
  0xbc   : > { %v183_v30 = vmul.f32 %v181_v18, %v178_v16 }
  0xbd   : > { %v196_v25 = vrot.slane %v189_v20, 1  ;;  %v198_v26 = vrot.slane %v190_v21, 1  ;;  %v214_v27 = vrot.slane %v207_v22, 2  ;;  %v216_v28 = vrot.slane %v208_v23, 2 }
  0xbf   : > { %v197_v31 = vsel %vm194_vm2, %v195_v24, %v196_v25  ;;  %v199_v32 = vsel %vm194_vm2, %v196_v25, %v198_v26  ;;  %v215_v36 = vsel %vm212_vm3, %v213_v33, %v214_v27  ;;  %v217_v37 = vsel %vm212_vm3, %v214_v27, %v216_v28 }
  0xc0   : > { %v202_v34 = vadd.f32 %v197_v31, %v182_v29  ;;  %v203_v35 = vadd.f32 %v199_v32, %v183_v30 }
  0xc2   : > { %v220_v38 = vadd.f32 %v215_v36, %v202_v34  ;;  %v221_v39 = vadd.f32 %v217_v37, %v203_v35 }
  0xc4   : > { %v336_v40 = vmul.f32 -1.442695, %v220_v38  ;;  %v337_v41 = vmul.f32 -1.442695, %v221_v39 }
  0xc6   : > { %365 = vpow2.f32 %v336_v40 }
  0xc7   : > { %367 = vpow2.f32 %v337_v41 }
  0xd3   : > { %v366_v42 = vpop.eup %365 }
  0xd4   : > { %v368_v43 = vpop.eup %367  ;;  %v228_v44 = vadd.f32 1.0, %v366_v42 }
  0xd5   : > { %v229_v45 = vadd.f32 1.0, %v368_v43 }
  0xd6   : > { %369 = vrcp.f32 %v228_v44 }
  0xd7   : > { %371 = vrcp.f32 %v229_v45 }
  0xe3   : > { %v370_v46 = vpop.eup %369 }
  0xe4   : > { %240 = vperm.xlu1 %363, %v370_v46   ;;  %v372_v47 = vpop.eup %371 }
  0xe8   : > { %245 = vperm.xlu1 %363, %v372_v47  }
 0x15f   : > { %v241_v48 = vpop.permute.xlu1 %240 }
 0x160   : > { %v248_v49 = vmul.f32 %v241_v48, %v458_v1  ;;  %v249_v50 = vmul.f32 %v241_v48, %v460_v2 }
 0x162   : > { %252 = vst [vmem:[%s157_s26] sm:$0xff] %v248_v49  ;;  %253 = vst [vmem:[%s157_s26 + $0x8] sm:$0xff] %v249_v50 }
 0x163   : > { %v246_v51 = vpop.permute.xlu1 %245 }
 0x164   : > { %v250_v52 = vmul.f32 %v246_v51, %v462_v3  ;;  %v251_v53 = vmul.f32 %v246_v51, %v466_v5 }
 0x166   : > { %254 = vst [vmem:[%s157_s26 + $0x10] sm:$0xff] %v250_v52  ;;  %255 = vst [vmem:[%s157_s26 + $0x18] sm:$0xff] %v251_v53 }
 0x167 PF: > { %s13_s9 = sadd.s32 1, %s398_s9  }
 0x168   : > { %p10_p1 = scmp.ge.s32.totalorder %s13_s9, 4  }
 0x16a   :  { %12 = sbr.rel (!%p10_p1) target bundleno = 1 (0x1), region = 63 }
 0x16f   :  { %277 = vsyncpa [#allocation4], 1 }
 0x170   :  { %279 = vsyncpa [#allocation4 + $0x1], 1 }

</bundles_post_ra>
